<compile_context>
chip_gen: v5e
topology: v5e:2x2
jax: 0.10.0
libtpu: 0.0.40
codegen_flags: <defaults>
</compile_context>

<pallas_src>
import functools
import math

import jax
import jax.numpy as jnp
from jax import lax
from jax.experimental import pallas as pl
from jax.experimental.pallas import tpu as pltpu


def _pos_emb_kernel(x_ref, tab_ref, o_ref, *, dim: int, group: int):
    """Compute one (rows, L) output tile.

    x_ref  : (rows, group) f32  -- `group` timesteps per lane-dense output row
    tab_ref: (2, L) f32         -- row 0: tiled freqs, row 1: sin-lane selector
    o_ref  : (rows, L) f32      -- L = group * dim (128 on the folded path)
    """
    rows, L = o_ref.shape
    xv = x_ref[...]                                    # (rows, group)
    if group == 1:
        xe = xv                                        # (rows, 1), broadcasts below
    else:
        # Expand each timestep across its `dim` contiguous lanes
        # (group-1 compare/selects per vreg; exact, guaranteed lowering).
        lane = lax.broadcasted_iota(jnp.int32, (rows, L), 1)
        xe = jnp.broadcast_to(xv[:, 0:1], (rows, L))
        for g in range(1, group):
            xe = jnp.where(lane >= g * dim, xv[:, g : g + 1], xe)

    freqs = tab_ref[0:1, :]                            # (1, L)
    sel = tab_ref[1:2, :] != 0.0                       # (1, L) True on sin lanes
    arg = xe * freqs                                   # (rows, L)
    # Exact sin/cos of the same f32 argument as the reference; one full-width,
    # unmasked store.
    o_ref[...] = jnp.where(sel, jnp.sin(arg), jnp.cos(arg))


# Per-buffer tile byte budget (output tile + lane-padded x tile).  With double
# buffering this keeps live VMEM around ~16 MiB: big enough to hide the
# ~0.35us/step grid overhead, safe on v7x's 64 MiB VMEM / 32 MiB scoped default.
_TARGET_TILE_BYTES = 8 * 1024 * 1024


def _tile_rows(total_rows: int, budget_rows: int) -> int:
    budget_rows = max(8, (budget_rows // 8) * 8)
    if total_rows <= 8:
        return total_rows                      # single block == full array dim
    if total_rows <= budget_rows:
        # Keep >= 2 grid steps so the "parallel" batch axis can shard across
        # the two TensorCores on v7x; costs one extra tiny step on v5e/v6e.
        return min(budget_rows, ((pl.cdiv(total_rows, 2) + 7) // 8) * 8)
    return budget_rows


def sinusoidal_pos_emb(x, dim):
    """x: (B,) timesteps (any real/int dtype). Returns (B, dim) float32,
    [:, :dim//2] = sin(x*f), [:, dim//2:] = cos(x*f), matching the PyTorch module."""
    assert dim % 2 == 0 and dim // 2 > 1, "dim must be even and >= 4"
    B = x.shape[0]
    half_dim = dim // 2

    # Hoisted constant tables (computed once outside the kernel, f32 exactly as
    # the reference computes them).
    scale = jnp.float32(math.log(10000.0) / (half_dim - 1))
    base = jnp.exp(jnp.arange(half_dim, dtype=jnp.float32) * -scale)     # (half_dim,)
    freqs_dim = jnp.concatenate([base, base])                            # (dim,)
    sel_dim = jnp.concatenate([jnp.ones(half_dim, jnp.float32),
                               jnp.zeros(half_dim, jnp.float32)])        # sin half

    x_f = x.astype(jnp.float32)

    if dim < 128 and 128 % dim == 0:
        # Lane-folded path: view the contiguous (B, dim) output as (B//G, 128).
        G = 128 // dim
        B_r = pl.cdiv(B, G) * G                 # tiny pad only if B % G != 0
        if B_r != B:
            x_f = jnp.pad(x_f, (0, B_r - B))
        R = B_r // G                            # lane-dense output rows
        L = 128
        xk = x_f.reshape(R, G)
        table = jnp.stack([jnp.tile(freqs_dim, G), jnp.tile(sel_dim, G)])  # (2, 128)
    else:
        # Direct path (dim >= 128 or dim not dividing 128): already lane-dense
        # enough; block last dim equals the full dim.
        G = 1
        B_r = B
        R = B
        L = dim
        xk = x_f.reshape(R, 1)
        table = jnp.stack([freqs_dim, sel_dim])                            # (2, dim)

    # Byte-budgeted batch tile.  The x tile (rows, G) is lane-padded to 128 in
    # VMEM, so account for 128 lanes of x per row as well as the output row.
    per_row_bytes = L * 4 + 128 * 4
    tr = _tile_rows(R, _TARGET_TILE_BYTES // per_row_bytes)
    grid = (pl.cdiv(R, tr),)                    # ragged last block: no pad/slice pass

    out = pl.pallas_call(
        functools.partial(_pos_emb_kernel, dim=dim, group=G),
        out_shape=jax.ShapeDtypeStruct((R, L), jnp.float32),
        grid=grid,
        in_specs=[
            pl.BlockSpec((tr, G), lambda i: (i, 0)),
            pl.BlockSpec((2, L), lambda i: (0, 0)),
        ],
        out_specs=pl.BlockSpec((tr, L), lambda i: (i, 0)),
        compiler_params=pltpu.CompilerParams(dimension_semantics=("parallel",)),
    )(xk, table)

    out = out.reshape(B_r, dim)                 # pure-metadata reshape (contiguous)
    return out if B_r == B else out[:B]         # slice only when B % G != 0


def sinusoidal_pos_emb_ref(x, dim):
    """Pure-JAX reference mirroring the PyTorch module exactly."""
    half_dim = dim // 2
    emb = math.log(10000.0) / (half_dim - 1)
    emb = jnp.exp(jnp.arange(half_dim, dtype=jnp.float32) * -emb)
    emb = x.astype(jnp.float32)[:, None] * emb[None, :]
    return jnp.concatenate([jnp.sin(emb), jnp.cos(emb)], axis=-1)


if __name__ == "__main__":
    key = jax.random.PRNGKey(0)
    k1, k2, k3 = jax.random.split(key, 3)
    DIM = 32  # SinusoidalPosEmb(dim=32), the module's typical configuration

    # Case 1: small batch, multiple of the lane-fold group (no pad, no slice).
    B1 = 8
    t1 = jax.random.uniform(k1, (B1,), dtype=jnp.float32, minval=0.0, maxval=1000.0)
    out1 = jax.block_until_ready(sinusoidal_pos_emb(t1, DIM))
    ref1 = sinusoidal_pos_emb_ref(t1, DIM)
    assert out1.shape == (B1, DIM), out1.shape
    assert out1.dtype == jnp.float32, out1.dtype
    assert jnp.allclose(out1, ref1, atol=1e-4, rtol=1e-5), float(jnp.max(jnp.abs(out1 - ref1)))

    # Case 2: batch not a multiple of the fold group or the tile
    # (exercises the tiny x pad, the ragged multi-step grid, and the final slice).
    B2 = 37
    t2 = jax.random.uniform(k2, (B2,), dtype=jnp.float32, minval=0.0, maxval=1000.0)
    out2 = jax.block_until_ready(sinusoidal_pos_emb(t2, DIM))
    ref2 = sinusoidal_pos_emb_ref(t2, DIM)
    assert out2.shape == (B2, DIM), out2.shape
    assert jnp.allclose(out2, ref2, atol=1e-4, rtol=1e-5), float(jnp.max(jnp.abs(out2 - ref2)))

    # Case 3: large dim -> direct (unfolded) path with a ragged 2-step grid.
    B3, DIM3 = 24, 256
    t3 = jax.random.uniform(k3, (B3,), dtype=jnp.float32, minval=0.0, maxval=1000.0)
    out3 = jax.block_until_ready(sinusoidal_pos_emb(t3, DIM3))
    ref3 = sinusoidal_pos_emb_ref(t3, DIM3)
    assert out3.shape == (B3, DIM3), out3.shape
    assert jnp.allclose(out3, ref3, atol=1e-4, rtol=1e-5), float(jnp.max(jnp.abs(out3 - ref3)))

    print("KERNEL_OK")
</pallas_src>

<mosaic_0001>
module attributes {stable_mosaic.version = 11 : i64} {
  func.func @_pos_emb_kernel(%arg0: i32, %arg1: memref<2x4xf32, #tpu.memory_space<vmem>>, %arg2: memref<2x128xf32, #tpu.memory_space<vmem>>, %arg3: memref<2x128xf32, #tpu.memory_space<vmem>>) attributes {dimension_semantics = [#tpu.dimension_semantics<parallel>], iteration_bounds = array<i64: 1>, scalar_prefetch = 0 : i64, scratch_operands = 0 : i64, tpu.core_type = #tpu.core_type<tc>, window_params = [{transform_indices = @transform_0, window_bounds = array<i64: 2, 4>}, {pipeline_mode = #tpu.pipeline_mode<synchronous>, transform_indices = @transform_1, window_bounds = array<i64: 2, 128>}, {transform_indices = @transform_2, window_bounds = array<i64: 2, 128>}]} {
    %c0 = arith.constant 0 : index
    %c0_0 = arith.constant 0 : index
    %0 = vector.load %arg1[%c0, %c0_0] : memref<2x4xf32, #tpu.memory_space<vmem>>, vector<2x4xf32>
    %1 = tpu.iota {dimensions = array<i32: 1>} : vector<2x128xi32>
    %2 = vector.extract_strided_slice %0 {offsets = [0, 0], sizes = [2, 1], strides = [1, 1]} : vector<2x4xf32> to vector<2x1xf32>
    %3 = vector.shape_cast %2 : vector<2x1xf32> to vector<2x1xf32>
    %4 = vector.broadcast %3 : vector<2x1xf32> to vector<2x128xf32>
    %c32_i32 = arith.constant 32 : i32
    %5 = vector.broadcast %c32_i32 : i32 to vector<2x128xi32>
    %6 = arith.cmpi sge, %1, %5 : vector<2x128xi32>
    %7 = vector.extract_strided_slice %0 {offsets = [0, 1], sizes = [2, 1], strides = [1, 1]} : vector<2x4xf32> to vector<2x1xf32>
    %8 = vector.shape_cast %7 : vector<2x1xf32> to vector<2x1xf32>
    %9 = vector.broadcast %8 : vector<2x1xf32> to vector<2x128xf32>
    %10 = arith.select %6, %9, %4 : vector<2x128xi1>, vector<2x128xf32>
    %c64_i32 = arith.constant 64 : i32
    %11 = vector.broadcast %c64_i32 : i32 to vector<2x128xi32>
    %12 = arith.cmpi sge, %1, %11 : vector<2x128xi32>
    %13 = vector.extract_strided_slice %0 {offsets = [0, 2], sizes = [2, 1], strides = [1, 1]} : vector<2x4xf32> to vector<2x1xf32>
    %14 = vector.shape_cast %13 : vector<2x1xf32> to vector<2x1xf32>
    %15 = vector.broadcast %14 : vector<2x1xf32> to vector<2x128xf32>
    %16 = arith.select %12, %15, %10 : vector<2x128xi1>, vector<2x128xf32>
    %c96_i32 = arith.constant 96 : i32
    %17 = vector.broadcast %c96_i32 : i32 to vector<2x128xi32>
    %18 = arith.cmpi sge, %1, %17 : vector<2x128xi32>
    %19 = vector.extract_strided_slice %0 {offsets = [0, 3], sizes = [2, 1], strides = [1, 1]} : vector<2x4xf32> to vector<2x1xf32>
    %20 = vector.shape_cast %19 : vector<2x1xf32> to vector<2x1xf32>
    %21 = vector.broadcast %20 : vector<2x1xf32> to vector<2x128xf32>
    %22 = arith.select %18, %21, %16 : vector<2x128xi1>, vector<2x128xf32>
    %c0_1 = arith.constant 0 : index
    %c0_2 = arith.constant 0 : index
    %23 = vector.load %arg2[%c0_1, %c0_2] : memref<2x128xf32, #tpu.memory_space<vmem>>, vector<1x128xf32>
    %c1 = arith.constant 1 : index
    %c0_3 = arith.constant 0 : index
    %24 = vector.load %arg2[%c1, %c0_3] : memref<2x128xf32, #tpu.memory_space<vmem>>, vector<1x128xf32>
    %cst = arith.constant 0.000000e+00 : f32
    %25 = vector.broadcast %cst : f32 to vector<1x128xf32>
    %26 = arith.cmpf one, %24, %25 : vector<1x128xf32>
    %27 = vector.broadcast %23 : vector<1x128xf32> to vector<2x128xf32>
    %28 = arith.mulf %22, %27 : vector<2x128xf32>
    %29 = math.sin %28 : vector<2x128xf32>
    %30 = math.cos %28 : vector<2x128xf32>
    %31 = vector.shape_cast %26 : vector<1x128xi1> to vector<1x128xi1>
    %32 = vector.broadcast %31 : vector<1x128xi1> to vector<2x128xi1>
    %33 = arith.select %32, %29, %30 : vector<2x128xi1>, vector<2x128xf32>
    %c0_4 = arith.constant 0 : index
    %c0_5 = arith.constant 0 : index
    %34 = vector.load %arg3[%c0_4, %c0_5] : memref<2x128xf32, #tpu.memory_space<vmem>>, vector<2x128xf32>
    tpu.vector_store %arg3[%c0_4, %c0_5], %33 {strides = array<i32>} : memref<2x128xf32, #tpu.memory_space<vmem>>, vector<2x128xf32>,
    return
  }
  func.func @transform_0(%arg0: i32) -> (i32, i32) {
    %c0_i32 = arith.constant 0 : i32
    %c0_i32_0 = arith.constant 0 : i32
    return %arg0, %c0_i32 : i32, i32
  }
  func.func @transform_1(%arg0: i32) -> (i32, i32) {
    %c0_i32 = arith.constant 0 : i32
    %c0_i32_0 = arith.constant 0 : i32
    %c0_i32_1 = arith.constant 0 : i32
    return %c0_i32, %c0_i32_0 : i32, i32
  }
  func.func @transform_2(%arg0: i32) -> (i32, i32) {
    %c0_i32 = arith.constant 0 : i32
    %c0_i32_0 = arith.constant 0 : i32
    return %arg0, %c0_i32 : i32, i32
  }
}

</mosaic_0001>

<bundles_post_ra>
// kernel: tpu_custom_call.1
= control target key start
LH: loop header
LB: loop body
LE: loop exit
PB: predicated region body
PF: predicated region fallthrough
CT: control target
= control target key end

     0   :  { %7 = vsyncpa [#allocation3], 0  ;;  %s612_s0 = inlined_call_operand.hbm [shape: f32[2,4], index: 0, kind: input, shape index: {}]   ;;  %s613_s1 = inlined_call_operand.hbm [shape: f32[2,128], index: 1, kind: input, shape index: {}]   ;;  %s614_s2 = inlined_call_operand.hbm [shape: f32[2,128], index: 2, kind: output, shape index: {}]  }
   0x1   :  { %8 = vsyncpa [#allocation6], 0 }
   0x2   :  { %9 = vsyncpa [#allocation4], 0  ;;  %s15_s11 = sshll.u32 %s612_s0, 4  ;;  %s506_s12 = smov [#allocation2]   ;;  %s16_s11 = int_to_ptr.hbm [resolvable:$true] %s15_s11 }
   0x3   :  { %s17_s13 = sshll.u32 %s506_s12, 4  ;;  %s26_s16 = sshll.u32 %s613_s1, 4  ;;  %s18_s13 = int_to_ptr.vmem [resolvable:$true] %s17_s13  ;;  %s27_s16 = int_to_ptr.hbm [resolvable:$true] %s26_s16 }
   0x4   :  { %20 = dma.hbm_to_vmem [thread:$0]  %s16_s11, 32, %s18_s13, [#allocation3]  }
   0x5   :  { %s507_s17 = smov [#allocation5]  }
   0x6   :  { %s28_s18 = sshll.u32 %s507_s17, 4  ;;  %s29_s18 = int_to_ptr.vmem [resolvable:$true] %s28_s18 }
   0x7   :  { %31 = dma.hbm_to_vmem [thread:$0]  %s27_s16, 32, %s29_s18, [#allocation6]  }
   0x8   :  { %500 = dma.done.wait [#allocation3], 32  }
   0x9   :  { %501 = vsyncadd [#allocation3], 4294967264 }
   0xa   :  { %502 = dma.done.wait [#allocation6], 32  }
   0xb   :  { %503 = vsyncadd [#allocation6], 4294967264  ;;  %v508_v0 = vmov 0   ;;  %v509_v1 = vmov 2   ;;  %v40_v2 = vld [vmem:[#allocation2] sm:$0x3]  ;;  %v41_v5 = vlaneseq }
   0xc   :  { %422 = vset.pattern.permute.xlu0 %v508_v0  ;;  %424 = vset.pattern.permute.xlu1 %v509_v1  ;;  %v510_v3 = vmov 1   ;;  %v511_v4 = vmov 3   ;;  %v427_v10 = vld [vmem:[#allocation5] ss:$0 sm:$0xff]  ;;  %v512_v27 = vmov 683565275  }
   0xd   :  { %45 = vperm.xlu0 %422, %v40_v2   ;;  %56 = vperm.xlu1 %424, %v40_v2   ;;  %v42_v8 = vand.u32 127, %v41_v5  ;;  %v513_v29 = vmov 2475754826   ;;  %v514_v32 = vmov 2131351028   ;;  %s518_s0 = smov [#allocation7]  }
   0xe   :  { %v515_v35 = vmov 2102212464   ;;  %v516_v38 = vmov 920167782   ;;  %v517_v41 = vmov 1326507024  }
   0xf   :  { %vm48_vm0 = vcmp.ge.s32.totalorder %v42_v8, 32  ;;  %vm54_vm1 = vcmp.ge.s32.totalorder %v42_v8, 64  ;;  %vm60_vm2 = vcmp.ge.s32.totalorder %v42_v8, 96  ;;  %s390_s1 = sshll.u32 %s518_s0, 4  ;;  %s392_s21 = sshll.u32 %s614_s2, 4  ;;  %s391_s1 = int_to_ptr.vmem [resolvable:$true] %s390_s1  ;;  %s393_s21 = int_to_ptr.hbm [resolvable:$true] %s392_s21 }
  0x15   :  { %423 = vset.pattern.permute.xlu0 %v510_v3  ;;  %425 = vset.pattern.permute.xlu1 %v511_v4 }
  0x16   :  { %50 = vperm.xlu0 %423, %v40_v2   ;;  %62 = vperm.xlu1 %425, %v40_v2  }
  0x1e   :  { %426 = vset.pattern.permute.xlu0 %v511_v4 }
  0x7f   :  { %v46_v6 = vpop.permute.xlu0 %45  ;;  %v57_v7 = vpop.permute.xlu1 %56 }
  0x88   :  { %v51_v9 = vpop.permute.xlu0 %50  ;;  %v63_v11 = vpop.permute.xlu1 %62 }
  0x89   :  { %v53_v12 = vsel %vm48_vm0, %v51_v9, %v46_v6 }
  0x8a   :  { %v59_v13 = vsel %vm54_vm1, %v57_v7, %v53_v12 }
  0x8b   :  { %v65_v14 = vsel %vm60_vm2, %v63_v11, %v59_v13 }
  0x8c   :  { %v541_v15 = vmul.f32 %v427_v10, %v65_v14 }
  0x8e   :  { %v74_v16 = vand.u32 2139095040, %v541_v15  ;;  %v71_v19 = vand.u32 2147483647, %v541_v15  ;;  %vm73_vm15 = vcmp.lt.s32.totalorder %v541_v15, 0 }
  0x90   :  { %v75_v17 = vshrl.u32 %v74_v16, 23  ;;  %v78_v21 = vand.u32 8388607, %v71_v19  ;;  %vm72_vm0 = vcmp.le.f32.partialorder %v71_v19, 0.7853982 }
  0x92   :  { %v403_v18 = vadd.s32 4294967169, %v75_v17  ;;  %v79_v25 = vor.u32 8388608, %v78_v21 }
  0x94   :  { %v81_v20 = vadd.s32 1, %v403_v18  ;;  %v558_v48 = vshll.u32 %v79_v25, 8 }
  0x96   :  { %vm82_vm3 = vcmp.gt.s32.totalorder %v81_v20, 0  ;;  %v120_v57 = vand.u32 65535, %v558_v48  ;;  %v121_v58 = vshrl.u32 %v558_v48, 16 }
  0x97   :  { %v83_v22 = vsel %vm82_vm3, %v81_v20, 0 }
  0x98   :  { %v85_v23 = vand.u32 31, %v83_v22  ;;  %v549_v26 = vshrl.u32 %v83_v22, 5 }
  0x9a   :  { %v547_v24 = vsub.s32 32, %v85_v23  ;;  %v88_v28 = vshll.u32 %v512_v27, %v85_v23  ;;  %v91_v30 = vshll.u32 %v513_v29, %v85_v23  ;;  %v94_v34 = vshll.u32 %v514_v32, %v85_v23 }
  0x9b   :  { %v97_v37 = vshll.u32 %v515_v35, %v85_v23  ;;  %v100_v40 = vshll.u32 %v516_v38, %v85_v23  ;;  %vm103_vm4 = vcmp.lt.s32.totalorder %v549_v26, 1  ;;  %vm106_vm5 = vcmp.lt.s32.totalorder %v549_v26, 4 }
  0x9c   :  { %v89_v31 = vshrl.u32 %v513_v29, %v547_v24  ;;  %v92_v33 = vshrl.u32 %v514_v32, %v547_v24  ;;  %v95_v36 = vshrl.u32 %v515_v35, %v547_v24  ;;  %v98_v39 = vshrl.u32 %v516_v38, %v547_v24 }
  0x9d   :  { %v101_v42 = vshrl.u32 %v517_v41, %v547_v24  ;;  %vm105_vm6 = vcmp.lt.s32.totalorder %v549_v26, 3  ;;  %vm104_vm7 = vcmp.lt.s32.totalorder %v549_v26, 2  ;;  %v87_v22 = vshrl.u32 %v512_v27, %v547_v24 }
  0x9e   :  { %v90_v43 = vor.u32 %v89_v31, %v88_v28  ;;  %v93_v44 = vor.u32 %v92_v33, %v91_v30  ;;  %v96_v45 = vor.u32 %v95_v36, %v94_v34  ;;  %v99_v46 = vor.u32 %v98_v39, %v97_v37 }
  0x9f   :  { %v102_v47 = vor.u32 %v101_v42, %v100_v40 }
  0xa0   :  { %v111_v49 = vsel %vm103_vm4, %v90_v43, %v93_v44  ;;  %v115_v50 = vsel %vm103_vm4, %v93_v44, %v96_v45  ;;  %v112_v51 = vsel %vm106_vm5, %v99_v46, 920167782  ;;  %v108_v18 = vsel %vm106_vm5, %v96_v45, 2102212464 }
  0xa1   :  { %v116_v52 = vsel %vm106_vm5, %v102_v47, 1326507024  ;;  %v113_v53 = vsel %vm105_vm6, %v96_v45, %v112_v51  ;;  %v107_v31 = vsel %vm103_vm4, %v87_v22, %v90_v43  ;;  %v109_v32 = vsel %vm105_vm6, %v93_v44, %v108_v18 }
  0xa2   :  { %v117_v54 = vsel %vm105_vm6, %v99_v46, %v116_v52  ;;  %v114_v55 = vsel %vm104_vm7, %v111_v49, %v113_v53  ;;  %v110_v24 = vsel %vm104_vm7, %v107_v31, %v109_v32 }
  0xa3   :  { %v118_v56 = vsel %vm104_vm7, %v115_v50, %v117_v54  ;;  %v144_v61 = vand.u32 65535, %v114_v55  ;;  %v145_v62 = vshrl.u32 %v114_v55, 16  ;;  %v164_v40 = vmul.u32 %v558_v48, %v110_v24 }
  0xa4   :  { %v122_v59 = vand.u32 65535, %v118_v56  ;;  %v123_v60 = vshrl.u32 %v118_v56, 16 }
  0xa5   :  { %v147_v2 = vmul.u32 %v145_v62, %v120_v57  ;;  %v148_v3 = vmul.u32 %v144_v61, %v121_v58  ;;  %v146_v7 = vmul.u32 %v144_v61, %v120_v57  ;;  %v149_v11 = vmul.u32 %v145_v62, %v121_v58 }
  0xa6   :  { %v125_v63 = vmul.u32 %v123_v60, %v120_v57  ;;  %v126_v1 = vmul.u32 %v122_v59, %v121_v58  ;;  %v124_v4 = vmul.u32 %v122_v59, %v120_v57  ;;  %v127_v6 = vmul.u32 %v123_v60, %v121_v58 }
  0xa7   :  { %v150_v8 = vshll.u32 %v147_v2, 16  ;;  %v152_v13 = vshll.u32 %v148_v3, 16  ;;  %v151_v29 = vshrl.u32 %v147_v2, 16  ;;  %v153_v35 = vshrl.u32 %v148_v3, 16 }
  0xa8   :  { %v128_v5 = vshll.u32 %v125_v63, 16  ;;  %v130_v9 = vshll.u32 %v126_v1, 16  ;;  %v129_v23 = vshrl.u32 %v125_v63, 16  ;;  %v131_v33 = vshrl.u32 %v126_v1, 16 }
  0xa9   :  { %vm154_vm9 = vc.u32 %v146_v7, %v150_v8  ;;  %v156_v14 = vadd.s32 %v150_v8, %v146_v7  ;;  %v67_v8 = vld [vmem:[#allocation5 + $0x1] sm:$0x1] }
  0xaa   :  { %vm132_vm8 = vc.u32 %v124_v4, %v128_v5  ;;  %v134_v10 = vadd.s32 %v128_v5, %v124_v4  ;;  %v155_v17 = vsel %vm154_vm9, 1, %v508_v0  ;;  %vm68_vm1 = vcmp.ne.f32.partialorder %v67_v8, 0.0 }
  0xab   :  { %v133_v12 = vsel %vm132_vm8, 1, %v508_v0  ;;  %v157_v21 = vadd.s32 %v155_v17, %v149_v11  ;;  %vm158_vm11 = vc.u32 %v156_v14, %v152_v13  ;;  %v160_v38 = vadd.s32 %v156_v14, %v152_v13 }
  0xac   :  { %v135_v16 = vadd.s32 %v133_v12, %v127_v6  ;;  %vm136_vm10 = vc.u32 %v134_v10, %v130_v9  ;;  %v159_v28 = vsel %vm158_vm11, 1, %v508_v0  ;;  %vm214_vm9 = vweird.f32 %v541_v15 }
  0xad   :  { %v137_v20 = vsel %vm136_vm10, 1, %v508_v0  ;;  %v161_v30 = vadd.s32 %v159_v28, %v157_v21 }
  0xae   :  { %v139_v25 = vadd.s32 %v137_v20, %v135_v16  ;;  %v380_v20 = vsel %vm68_vm1, 1, %v508_v0 }
  0xaf   :  { %v162_v36 = vadd.s32 %v161_v30, %v151_v29  ;;  %v381_v28 = vperm.slane %v380_v20, 0 }
  0xb0   :  { %v140_v34 = vadd.s32 %v139_v25, %v129_v23 }
  0xb1   :  { %v163_v27 = vadd.s32 %v162_v36, %v153_v35  ;;  %vm601_vm8 = vcmp.eq.s32.totalorder %v381_v28, 1 }
  0xb2   :  { %v141_v37 = vadd.s32 %v140_v34, %v131_v33 }
  0xb3   :  { %v167_v39 = vadd.s32 1, %v163_v27 }
  0xb4   :  { %vm166_vm12 = vc.u32 %v141_v37, %v160_v38  ;;  %v165_v26 = vadd.s32 %v160_v38, %v141_v37 }
  0xb5   :  { %v168_v41 = vsel %vm166_vm12, %v167_v39, %v163_v27 }
  0xb6   :  { %v169_v42 = vadd.s32 %v168_v41, %v164_v40 }
  0xb8   :  { %v170_v43 = vadd.s32 536870912, %v169_v42 }
  0xba   :  { %v171_v45 = vshrl.u32 %v170_v43, 30 }
  0xbc   :  { %v172_v46 = vshll.u32 %v171_v45, 30  ;;  %v195_v3 = vsub.s32 4, %v171_v45 }
  0xbe   :  { %v173_v44 = vsub.s32 %v169_v42, %v172_v46  ;;  %v196_v7 = vsel %vm73_vm15, %v195_v3, %v171_v45 }
  0xbf   :  { %v198_v11 = vsel %vm72_vm0, 0, %v196_v7 }
  0xc0   :  { %vm174_vm13 = vcmp.lt.s32.totalorder %v173_v44, 0  ;;  %v175_v47 = vsub.s32 0, %v173_v44  ;;  %v215_v17 = vadd.s32 3, %v198_v11  ;;  %v370_v23 = vand.u32 3, %v198_v11 }
  0xc2   :  { %v176_v49 = vsel %vm174_vm13, %v175_v47, %v173_v44  ;;  %v216_v25 = vand.u32 3, %v215_v17  ;;  %vm371_vm2 = vcmp.lt.s32.totalorder %v370_v23, 2  ;;  %vm372_vm3 = vcmp.eq.s32.totalorder %v370_v23, 0 }
  0xc3   :  { %v177_v50 = vclz %v176_v49  ;;  %vm375_vm4 = vcmp.eq.s32.totalorder %v370_v23, 2 }
  0xc4   :  { %vm217_vm5 = vcmp.lt.s32.totalorder %v216_v25, 2  ;;  %vm218_vm6 = vcmp.eq.s32.totalorder %v216_v25, 0  ;;  %vm221_vm7 = vcmp.eq.s32.totalorder %v216_v25, 2 }
  0xc5   :  { %v404_v51 = vadd.s32 4294967294, %v177_v50 }
  0xc7   :  { %vm405_vm14 = vcmp.lt.s32.totalorder %v404_v51, 0 }
  0xc8   :  { %v180_v52 = vsel %vm405_vm14, 0, %v404_v51 }
  0xc9   :  { %v181_v53 = vsub.s32 32, %v180_v52  ;;  %v185_v54 = vsub.s32 4294967266, %v180_v52  ;;  %v182_v55 = vshll.u32 %v173_v44, %v180_v52 }
  0xcb   :  { %v183_v56 = vshrl.u32 %v165_v26, %v181_v53  ;;  %v186_v57 = vadd.s32 127, %v185_v54 }
  0xcd   :  { %v184_v48 = vor.u32 %v183_v56, %v182_v55  ;;  %v187_v58 = vshll.u32 %v186_v57, 23 }
  0xcf   :  { %v188_v59 = vor.u32 4788187, %v187_v58  ;;  %v191_v61 = vcvt.s32.f32 %v184_v48 }
  0xd1   :  { %v189_v60 = vand.u32 2147483647, %v188_v59 }
  0xd3   :  { %v192_v62 = vmul.f32 %v191_v61, %v189_v60 }
  0xd5   :  { %v193_v63 = vxor.u32 2147483648, %v192_v62 }
  0xd7   :  { %v194_v1 = vsel %vm73_vm15, %v193_v63, %v192_v62 }
  0xd8   :  { %v197_v2 = vsel %vm72_vm0, %v541_v15, %v194_v1 }
  0xd9   :  { %v199_v4 = vmul.f32 %v197_v2, %v197_v2 }
  0xdb   :  { %v200_v5 = vmul.f32 -0.001358992, %v199_v4  ;;  %v207_v6 = vmul.f32 -0.00019511016, %v199_v4 }
  0xdd   :  { %v201_v9 = vadd.f32 0.041655596, %v200_v5  ;;  %v208_v10 = vadd.f32 0.008332121, %v207_v6 }
  0xdf   :  { %v202_v12 = vmul.f32 %v201_v9, %v199_v4  ;;  %v209_v13 = vmul.f32 %v208_v10, %v199_v4 }
  0xe1   :  { %v203_v14 = vadd.f32 -0.4999988, %v202_v12  ;;  %v210_v16 = vadd.f32 -0.16666654, %v209_v13 }
  0xe3   :  { %v204_v18 = vmul.f32 %v203_v14, %v199_v4  ;;  %v211_v19 = vmul.f32 %v210_v16, %v199_v4 }
  0xe5   :  { %v205_v21 = vadd.f32 1.0, %v204_v18  ;;  %v212_v22 = vadd.f32 1.0, %v211_v19 }
  0xe7   :  { %v213_v29 = vmul.f32 %v212_v22, %v197_v2  ;;  %v222_v30 = vxor.u32 2147483648, %v205_v21 }
  0xe9   :  { %v219_v31 = vxor.u32 2147483648, %v213_v29  ;;  %v223_v33 = vsel %vm221_vm7, %v222_v30, %v213_v29  ;;  %v377_v35 = vsel %vm375_vm4, %v222_v30, %v213_v29 }
  0xeb   :  { %v220_v0 = vsel %vm218_vm6, %v205_v21, %v219_v31  ;;  %v374_v34 = vsel %vm372_vm3, %v205_v21, %v219_v31 }
  0xec   :  { %v224_v36 = vsel %vm217_vm5, %v220_v0, %v223_v33  ;;  %v378_v37 = vsel %vm371_vm2, %v374_v34, %v377_v35 }
  0xed   :  { %v225_v38 = vsel %vm214_vm9, nan, %v224_v36  ;;  %v379_v24 = vsel %vm214_vm9, nan, %v378_v37 }
  0xee   :  { %v383_v27 = vsel %vm601_vm8, %v225_v38, %v379_v24 }
  0xef   :  { %384 = vst [vmem:[#allocation7] sm:$0x3] %v383_v27 }
  0xf0   :  { %395 = dma.vmem_to_hbm [thread:$0]  %s391_s1, 32, %s393_s21, [#allocation4]  }
  0xf1   :  { %504 = dma.done.wait [#allocation4], 32  }
  0xf2   :  { %505 = vsyncadd [#allocation4], 4294967264 }
  0xf3   :  { %400 = vsyncpa [#allocation3], 1 }
  0xf4   :  { %401 = vsyncpa [#allocation6], 1 }
  0xf5   :  { %402 = vsyncpa [#allocation4], 1 }

</bundles_post_ra>
